<compile_context>
chip_gen: v5e
topology: v5e:2x2
jax: 0.10.0
libtpu: 0.0.40
codegen_flags: <defaults>
</compile_context>

<pallas_src>
import functools

import jax
import jax.numpy as jnp
from jax.experimental import pallas as pl
from jax.experimental.pallas import tpu as pltpu


def _global_attn_kernel(enc_ref, pre_ref, we_t_ref, v_ref, out_ref, *,
                        bf16_tanh):
    # enc_ref:  (S, TB, E)  encoder outputs, NATIVE (seq, batch, feat) layout
    # pre_ref:  (TB, E)     hoisted decoder projection: dec @ Wd^T + b   (f32)
    # we_t_ref: (E, E)      encoder half of the Linear weight, pre-transposed
    # v_ref:    (1, 1)      scalar v parameter (SMEM)
    # out_ref:  (TB, S)     attention weights (lane-dense along S)
    s, tb, e = enc_ref.shape
    enc = enc_ref[...]
    we_t = we_t_ref[...]

    # Single large-M MXU matmul: (S*TB, E) @ (E, E).  The wrapper guarantees
    # TB is a multiple of the sublane tile for enc's dtype, so this leading-dim
    # collapse is a layout-preserving view.
    z = jnp.dot(enc.reshape(s * tb, e), we_t,
                preferred_element_type=jnp.float32).reshape(s, tb, e)

    # energy = tanh(cat(dec, enc) @ W^T + b) == tanh(enc @ We^T + (dec @ Wd^T + b))
    act = z + pre_ref[...][None, :, :]                           # (S, TB, E) f32
    if bf16_tanh:
        # v6e/v7x EUP supports bf16: ~2x on the (binding) transcendental unit.
        act = act.astype(jnp.bfloat16)
    energy = jnp.tanh(act).astype(jnp.float32)                   # (S, TB, E)

    # attn_energies = sum(v * energy, axis=-1)   (v is a scalar parameter)
    # TODO(synk): if a bundle profile shows the vex slots saturating, compute
    # this lane reduction as a skinny matmul energy_flat @ ones((E, 1)) instead.
    scores = v_ref[0, 0] * jnp.sum(energy, axis=-1)              # (S, TB)
    scores = scores.T                                            # (TB, S) via XLU

    # numerically stable softmax over the sequence (lane) axis
    m = jnp.max(scores, axis=-1, keepdims=True)                  # (TB, 1)
    p = jnp.exp(scores - m)
    denom = jnp.sum(p, axis=-1, keepdims=True)
    r = pl.reciprocal(denom, approx=True)
    r = r * (2.0 - denom * r)          # one Newton step -> ~f32-exact rows
    out_ref[...] = p * r                                         # (TB, S)


@functools.partial(jax.jit, static_argnames=("batch_block", "matmul_dtype"))
def global_attn_forward(encoder_outputs, decoder_current_hidden, W, b,
                        v_scalar, *, batch_block=64, matmul_dtype=jnp.bfloat16):
    """encoder_outputs: (S, B, E); decoder_current_hidden: (1, B, D).
    W: (E, D+E) Linear weight, b: (E,) bias, v_scalar: () scalar parameter.
    Returns attention weights of shape (B, 1, S) (rows sum to 1)."""
    S, B, E = encoder_outputs.shape
    D = decoder_current_hidden.shape[-1]

    # ---- parameter prep (plain JAX, fused under jit) ----
    dec_bd = decoder_current_hidden[0]                           # (B, D)
    Wd = W[:, :D]                                                # (E, D)
    We_T = jnp.transpose(W[:, D:])                               # (E, E)
    # Hoisted decoder projection + bias: one (B,D)@(D,E) matmul replaces B
    # degenerate M=1 matmuls inside the kernel.
    pre = (dec_bd @ Wd.T + b).astype(jnp.float32)                # (B, E)
    v2d = jnp.asarray(v_scalar, jnp.float32).reshape(1, 1)       # (1, 1) -> SMEM

    # bf16 matmul inputs by default (f32 accumulation in-kernel).
    # TODO(synk): if the upstream producer can emit bf16 encoder outputs
    # directly, this cast (one extra HBM pass over enc) disappears entirely.
    enc_k = encoder_outputs.astype(matmul_dtype)                 # (S, B, E)
    we_k = We_T.astype(matmul_dtype)
    itemsize = jnp.dtype(matmul_dtype).itemsize
    sub = 16 if itemsize < 4 else 8        # sublane-tile rows for enc's dtype

    # ---- generation-aware VMEM budget / batch-block sizing ----
    try:
        phys_vmem = int(pltpu.get_tpu_info().vmem_capacity_bytes)
    except Exception:
        phys_vmem = 64 << 20               # conservative: v7x per-core VMEM
    budget = int(phys_vmem * 0.75)         # headroom for Mosaic scratch

    def vmem_need(tb):
        return (2 * tb * S * E * itemsize      # double-buffered enc blocks
                + 2 * E * E * itemsize         # We^T blocks (constant index_map)
                + 2 * tb * E * 4               # pre blocks
                + 2 * tb * S * 4               # output blocks
                + 3 * tb * S * E * 4           # f32 temporaries: z, energy, p
                + (2 << 20))                   # slack

    B_sub = ((B + sub - 1) // sub) * sub
    TB = min(B_sub, max(sub, (batch_block // sub) * sub))
    while TB > sub and vmem_need(TB) > budget:
        TB -= sub
    # Keep >=2 grid programs when possible so a 2-TensorCore chip (v7x) is
    # fully used.
    if B_sub // TB < 2 and B_sub >= 2 * sub:
        TB = max(sub, ((B_sub // 2) // sub) * sub)
    B_pad = ((B + TB - 1) // TB) * TB
    grid_b = B_pad // TB
    # TODO(synk): for very long sequences (vmem_need(sub) > budget), add an
    # inner "arbitrary" S-tile grid axis with an online (flash-style) softmax
    # so VMEM use is decoupled from S.
    # TODO(synk): single-buffer the constant We^T block (pipeline_mode) and pad
    # E to the MXU-native multiple for very large E; both are skipped here to
    # keep a single proven lowering path.

    # Zero-pad the batch so every block is a whole number of sublane tiles:
    # makes the in-kernel (S,TB,E)->(S*TB,E) collapse layout-preserving, and
    # padded rows stay finite (enc=0, pre=0 -> uniform softmax, sliced off).
    # No copy is incurred when B is already a multiple of TB.
    if B_pad != B:
        enc_k = jnp.pad(enc_k, ((0, 0), (0, B_pad - B), (0, 0)))
        pre = jnp.pad(pre, ((0, B_pad - B), (0, 0)))

    # bf16 tanh only where the EUP supports it (v6e/v7x, never v5e) and only
    # when the matmul inputs are already bf16 (keeps the f32 path accurate).
    try:
        kind = jax.devices()[0].device_kind.lower()
    except Exception:
        kind = ""
    eup_bf16 = not any(t in kind for t in ("v2", "v3", "v4", "v5"))
    use_bf16_tanh = bool(eup_bf16
                         and jnp.dtype(matmul_dtype) == jnp.dtype(jnp.bfloat16))

    vmem_limit = int(min(max(vmem_need(TB), 32 << 20), int(phys_vmem * 0.9)))

    out = pl.pallas_call(
        functools.partial(_global_attn_kernel, bf16_tanh=use_bf16_tanh),
        out_shape=jax.ShapeDtypeStruct((B_pad, S), jnp.float32),
        grid_spec=pltpu.PrefetchScalarGridSpec(
            num_scalar_prefetch=0,
            grid=(grid_b,),
            in_specs=[
                pl.BlockSpec((S, TB, E), lambda bi: (0, bi, 0)),    # enc (native)
                pl.BlockSpec((TB, E), lambda bi: (bi, 0)),          # pre
                pl.BlockSpec((E, E), lambda bi: (0, 0)),            # We^T
                pl.BlockSpec(memory_space=pltpu.MemorySpace.SMEM),  # v scalar
            ],
            out_specs=pl.BlockSpec((TB, S), lambda bi: (bi, 0)),
        ),
        compiler_params=pltpu.CompilerParams(
            dimension_semantics=("parallel",),
            vmem_limit_bytes=vmem_limit),
    )(enc_k, pre, we_k, v2d)

    return out[:B, None, :]                                      # (B, 1, S)


def reference_forward(encoder_outputs, decoder_current_hidden, W, b, v_scalar):
    S, B, E = encoder_outputs.shape
    D = decoder_current_hidden.shape[-1]
    dec = jnp.broadcast_to(decoder_current_hidden, (S, B, D))
    cat = jnp.concatenate([dec, encoder_outputs], axis=2)        # (S, B, D+E)
    energy = jnp.tanh(jnp.einsum("sbk,ek->sbe", cat, W) + b)     # (S, B, E)
    scores = jnp.sum(v_scalar * energy, axis=2)                  # (S, B)
    return jax.nn.softmax(scores.T, axis=1)[:, None, :]          # (B, 1, S)


if __name__ == "__main__":
    # small shapes consistent with the module
    S, B, E, D = 8, 2, 32, 32

    key = jax.random.PRNGKey(0)
    k_enc, k_dec, k_w, k_b = jax.random.split(key, 4)

    encoder_outputs = jax.random.normal(k_enc, (S, B, E), dtype=jnp.float32)
    decoder_hidden = jax.random.normal(k_dec, (1, B, D), dtype=jnp.float32)

    # nn.Linear(D+E, E) default init: U(-1/sqrt(fan_in), 1/sqrt(fan_in))
    fan_in = D + E
    bound = 1.0 / (fan_in ** 0.5)
    W = jax.random.uniform(k_w, (E, fan_in), jnp.float32, -bound, bound)
    bias = jax.random.uniform(k_b, (E,), jnp.float32, -bound, bound)
    # self.v = nn.Parameter(torch.tensor(encoder_hidden_dim)) -> scalar == E
    v_scalar = jnp.float32(E)

    ref = reference_forward(encoder_outputs, decoder_hidden, W, bias, v_scalar)

    # Default (performance) path: bf16 matmul inputs, f32 accumulation.
    # v (= E) amplifies bf16 logit rounding, so only loose agreement with the
    # f32 reference is meaningful here; rows must still sum to 1 exactly-ish.
    out_bf16 = jax.block_until_ready(
        global_attn_forward(encoder_outputs, decoder_hidden, W, bias, v_scalar))
    assert out_bf16.shape == (B, 1, S)
    assert bool(jnp.all(jnp.isfinite(out_bf16)))
    assert jnp.allclose(jnp.sum(out_bf16, axis=-1), 1.0, atol=1e-3)
    assert float(jnp.max(jnp.abs(out_bf16 - ref))) < 0.5

    # Full-precision path: tight check against the f32 reference.
    out_f32 = jax.block_until_ready(
        global_attn_forward(encoder_outputs, decoder_hidden, W, bias, v_scalar,
                            matmul_dtype=jnp.float32))
    assert out_f32.shape == (B, 1, S)
    assert jnp.allclose(out_f32, ref, rtol=2e-2, atol=2e-3), (
        float(jnp.max(jnp.abs(out_f32 - ref))))
    assert jnp.allclose(jnp.sum(out_f32, axis=-1), 1.0, atol=1e-3)

    print("KERNEL_OK")
</pallas_src>

<mosaic_0001>
module attributes {stable_mosaic.version = 11 : i64} {
  func.func @_global_attn_kernel(%arg0: i32, %arg1: memref<8x16x32xbf16, #tpu.memory_space<vmem>>, %arg2: memref<16x32xf32, #tpu.memory_space<vmem>>, %arg3: memref<32x32xbf16, #tpu.memory_space<vmem>>, %arg4: memref<1x1xf32, #tpu.memory_space<smem>>, %arg5: memref<16x8xf32, #tpu.memory_space<vmem>>) attributes {dimension_semantics = [#tpu.dimension_semantics<parallel>], iteration_bounds = array<i64: 1>, scalar_prefetch = 0 : i64, scratch_operands = 0 : i64, tpu.core_type = #tpu.core_type<tc>, window_params = [{transform_indices = @transform_0, window_bounds = array<i64: 8, 16, 32>}, {transform_indices = @transform_1, window_bounds = array<i64: 16, 32>}, {pipeline_mode = #tpu.pipeline_mode<synchronous>, transform_indices = @transform_2, window_bounds = array<i64: 32, 32>}, {transform_indices = @transform_3, window_bounds = array<i64: 1, 1>}, {transform_indices = @transform_4, window_bounds = array<i64: 16, 8>}]} {
    %c0 = arith.constant 0 : index
    %c0_0 = arith.constant 0 : index
    %c0_1 = arith.constant 0 : index
    %0 = vector.load %arg1[%c0, %c0_0, %c0_1] : memref<8x16x32xbf16, #tpu.memory_space<vmem>>, vector<8x16x32xbf16>
    %c0_2 = arith.constant 0 : index
    %c0_3 = arith.constant 0 : index
    %1 = vector.load %arg3[%c0_2, %c0_3] : memref<32x32xbf16, #tpu.memory_space<vmem>>, vector<32x32xbf16>
    %2 = vector.shape_cast %0 : vector<8x16x32xbf16> to vector<128x32xbf16>
    %cst = arith.constant dense<0.000000e+00> : vector<128x32xf32>
    %3 = tpu.matmul %2, %1, %cst {dimension_numbers = #tpu.dot_dimension_numbers<[1], [0], [0], [1], [0, 0, 1, 1], [], []>} : vector<128x32xbf16>, vector<32x32xbf16>, vector<128x32xf32> -> vector<128x32xf32>
    %4 = vector.shape_cast %3 : vector<128x32xf32> to vector<8x16x32xf32>
    %c0_4 = arith.constant 0 : index
    %c0_5 = arith.constant 0 : index
    %5 = vector.load %arg2[%c0_4, %c0_5] : memref<16x32xf32, #tpu.memory_space<vmem>>, vector<16x32xf32>
    %6 = vector.shape_cast %5 : vector<16x32xf32> to vector<1x16x32xf32>
    %7 = vector.broadcast %6 : vector<1x16x32xf32> to vector<8x16x32xf32>
    %8 = arith.addf %4, %7 : vector<8x16x32xf32>
    %9 = arith.truncf %8 : vector<8x16x32xf32> to vector<8x16x32xbf16>
    %10 = math.tanh %9 : vector<8x16x32xbf16>
    %11 = arith.extf %10 : vector<8x16x32xbf16> to vector<8x16x32xf32>
    %c0_6 = arith.constant 0 : index
    %c0_7 = arith.constant 0 : index
    %12 = memref.load %arg4[%c0_6, %c0_7] : memref<1x1xf32, #tpu.memory_space<smem>>
    %cst_8 = arith.constant dense<0.000000e+00> : vector<8x16xf32>
    %13 = vector.multi_reduction <add>, %11, %cst_8 [2] : vector<8x16x32xf32> to vector<8x16xf32>
    %14 = vector.broadcast %12 : f32 to vector<8x16xf32>
    %15 = arith.mulf %14, %13 : vector<8x16xf32>
    %16 = tpu.transpose %15, [1, 0] : vector<8x16xf32> -> vector<16x8xf32>
    %cst_9 = arith.constant dense<0xFF800000> : vector<16xf32>
    %17 = vector.multi_reduction <maximumf>, %16, %cst_9 [1] : vector<16x8xf32> to vector<16xf32>
    %18 = vector.shape_cast %17 : vector<16xf32> to vector<16x1xf32>
    %19 = vector.broadcast %18 : vector<16x1xf32> to vector<16x8xf32>
    %20 = arith.subf %16, %19 : vector<16x8xf32>
    %21 = math.exp %20 : vector<16x8xf32>
    %cst_10 = arith.constant dense<0.000000e+00> : vector<16xf32>
    %22 = vector.multi_reduction <add>, %21, %cst_10 [1] : vector<16x8xf32> to vector<16xf32>
    %23 = vector.shape_cast %22 : vector<16xf32> to vector<16x1xf32>
    %24 = tpu.reciprocal %23 {approx = true} : vector<16x1xf32> -> vector<16x1xf32>
    %25 = arith.mulf %23, %24 : vector<16x1xf32>
    %cst_11 = arith.constant 2.000000e+00 : f32
    %26 = vector.broadcast %cst_11 : f32 to vector<16x1xf32>
    %27 = arith.subf %26, %25 : vector<16x1xf32>
    %28 = arith.mulf %24, %27 : vector<16x1xf32>
    %29 = vector.broadcast %28 : vector<16x1xf32> to vector<16x8xf32>
    %30 = arith.mulf %21, %29 : vector<16x8xf32>
    %c0_12 = arith.constant 0 : index
    %c0_13 = arith.constant 0 : index
    %31 = vector.load %arg5[%c0_12, %c0_13] : memref<16x8xf32, #tpu.memory_space<vmem>>, vector<16x8xf32>
    tpu.vector_store %arg5[%c0_12, %c0_13], %30 {strides = array<i32>} : memref<16x8xf32, #tpu.memory_space<vmem>>, vector<16x8xf32>,
    return
  }
  func.func @transform_0(%arg0: i32) -> (i32, i32, i32) {
    %c0_i32 = arith.constant 0 : i32
    %c0_i32_0 = arith.constant 0 : i32
    %c0_i32_1 = arith.constant 0 : i32
    return %c0_i32, %arg0, %c0_i32_0 : i32, i32, i32
  }
  func.func @transform_1(%arg0: i32) -> (i32, i32) {
    %c0_i32 = arith.constant 0 : i32
    %c0_i32_0 = arith.constant 0 : i32
    return %arg0, %c0_i32 : i32, i32
  }
  func.func @transform_2(%arg0: i32) -> (i32, i32) {
    %c0_i32 = arith.constant 0 : i32
    %c0_i32_0 = arith.constant 0 : i32
    %c0_i32_1 = arith.constant 0 : i32
    return %c0_i32, %c0_i32_0 : i32, i32
  }
  func.func @transform_3(%arg0: i32) -> (i32, i32) {
    %c0_i32 = arith.constant 0 : i32
    %c0_i32_0 = arith.constant 0 : i32
    %c0_i32_1 = arith.constant 0 : i32
    return %c0_i32, %c0_i32_0 : i32, i32
  }
  func.func @transform_4(%arg0: i32) -> (i32, i32) {
    %c0_i32 = arith.constant 0 : i32
    %c0_i32_0 = arith.constant 0 : i32
    return %arg0, %c0_i32 : i32, i32
  }
}

</mosaic_0001>

<bundles_post_ra>
// kernel: global_attn_forward.1
= control target key start
LH: loop header
LB: loop body
LE: loop exit
PB: predicated region body
PF: predicated region fallthrough
CT: control target
= control target key end

     0   :  { %vm91_vm0 = vcmask 261120   ;;  %vm334_vm1 = vcmask 130112   ;;  %vm357_vm2 = vcmask 1041409   ;;  %vm359_vm3 = vcmask 1042434   ;;  %s672_s2 = inlined_call_operand.vmem [shape: bf16[32,32], index: 2, kind: input, shape index: {}]   ;;  %s673_s0 = inlined_call_operand.vmem [shape: bf16[8,16,32], index: 0, kind: input, shape index: {}]   ;;  %s674_s1 = inlined_call_operand.vmem [shape: f32[16,32], index: 1, kind: input, shape index: {}]   ;;  %s675_s3 = inlined_call_operand.<no memory space> [shape: f32[1,1], index: 3, kind: input, shape index: {}]   ;;  %s676_s4 = inlined_call_operand.vmem [shape: f32[16,8], index: 4, kind: output, shape index: {}]  }
   0x1   :  { %v496_v0 = vld [vmem:[%s672_s2 + $0x8] sm:$0xff]  ;;  %v495_v1 = vld [vmem:[%s672_s2] sm:$0xff]  ;;  %v489_v3 = vld [vmem:[%s673_s0 + $0x10] sm:$0xff]  ;;  %vm361_vm4 = vcmask 1043459   ;;  %vm363_vm5 = vcmask 1044484   ;;  %vm365_vm6 = vcmask 1045509  }
   0x2   :  { %122 = vmatpush.bf16.msra.mxu0 %v496_v0  ;;  %497 = vmatpush.bf16.msra.mxu1 %v496_v0  ;;  %v487_v2 = vld [vmem:[%s673_s0] sm:$0xff]  ;;  %v493_v4 = vld [vmem:[%s673_s0 + $0x30] sm:$0xff]  ;;  %v488_v6 = vld [vmem:[%s673_s0 + $0x8] sm:$0xff]  ;;  %vm367_vm7 = vcmask 1046534   ;;  %vm369_vm8 = vcmask 1047559   ;;  %vm404_vm9 = vcmask 64512  }
   0x3   :  { %499 = vmatpush.bf16.msra.mxu3 %v496_v0  ;;  %498 = vmatpush.bf16.msra.mxu2 %v496_v0  ;;  %v491_v5 = vld [vmem:[%s673_s0 + $0x20] sm:$0xff]  ;;  %v490_v7 = vld [vmem:[%s673_s0 + $0x18] sm:$0xff]  ;;  %v492_v8 = vld [vmem:[%s673_s0 + $0x28] sm:$0xff] }
   0x4   :  { %v494_v9 = vld [vmem:[%s673_s0 + $0x38] sm:$0xff]  ;;  %v610_v12 = vld [vmem:[%s674_s1] sm:$0xff]  ;;  %v615_v13 = vld [vmem:[%s674_s1 + $0x8] sm:$0xff] }
   0x6   :  { %123 = vmatpush.bf16.msra.mxu0 %v495_v1  ;;  %500 = vmatpush.bf16.msra.mxu1 %v495_v1 }
   0x7   :  { %502 = vmatpush.bf16.msra.mxu3 %v495_v1  ;;  %501 = vmatpush.bf16.msra.mxu2 %v495_v1 }
   0x9   :  { %479 = vmatmul.msk.bf16.vlgmr.msra.gmra.mxu0 %vm91_vm0, %v487_v2  ;;  %481 = vmatmul.msk.bf16.vlgmr.msra.gmra.mxu1 %vm91_vm0, %v489_v3 }
   0xa   :  { %485 = vmatmul.msk.bf16.vlgmr.msra.gmra.mxu3 %vm91_vm0, %v493_v4  ;;  %483 = vmatmul.msk.bf16.vlgmr.msra.gmra.mxu2 %vm91_vm0, %v491_v5 }
  0x19   :  { %480 = vmatmul.msk.bf16.gmra.mxu0 %vm91_vm0, %v488_v6  ;;  %482 = vmatmul.msk.bf16.gmra.mxu1 %vm91_vm0, %v490_v7 }
  0x1a   :  { %484 = vmatmul.msk.bf16.gmra.mxu2 %vm91_vm0, %v492_v8  ;;  %486 = vmatmul.msk.bf16.gmra.mxu3 %vm91_vm0, %v494_v9 }
  0x86   :  { %v125_v10 = vpop.f32.mrf.mxu0  ;;  %v135_v11 = vpop.f32.mrf.mxu1 }
  0x87   :  { %v171_v14 = vadd.f32 %v610_v12, %v135_v11  ;;  %v167_v19 = vadd.f32 %v610_v12, %v125_v10 }
  0x8d   :  { %v155_v15 = vpop.f32.mrf.mxu3  ;;  %v145_v16 = vpop.f32.mrf.mxu2 }
  0x8e   :  { %v127_v17 = vpop.f32.mrf.mxu0  ;;  %v137_v18 = vpop.f32.mrf.mxu1  ;;  %v175_v28 = vadd.f32 %v610_v12, %v145_v16  ;;  %v179_v31 = vadd.f32 %v610_v12, %v155_v15 }
  0x8f   :  { %v168_v20 = vadd.f32 %v615_v13, %v127_v17  ;;  %v172_v21 = vadd.f32 %v615_v13, %v137_v18 }
  0x91   :  { %v183_v22 = vpack.c.bf16 %v168_v20, %v167_v19  ;;  %v185_v23 = vpack.c.bf16 %v172_v21, %v171_v14 }
  0x93   :  { %v191_v24 = vunpack.c.l.bf16 %v183_v22  ;;  %v192_v25 = vunpack.c.h.bf16 %v183_v22  ;;  %v195_v26 = vunpack.c.l.bf16 %v185_v23  ;;  %v196_v27 = vunpack.c.h.bf16 %v185_v23 }
  0x95   :  { %504 = vtanh.f32 %v191_v24  ;;  %v157_v29 = vpop.f32.mrf.mxu3  ;;  %v147_v30 = vpop.f32.mrf.mxu2 }
  0x96   :  { %506 = vtanh.f32 %v192_v25  ;;  %v180_v32 = vadd.f32 %v615_v13, %v157_v29  ;;  %v130_v33 = vpop.f32.mrf.mxu0  ;;  %v176_v34 = vadd.f32 %v615_v13, %v147_v30  ;;  %v140_v35 = vpop.f32.mrf.mxu1 }
  0x97   :  { %508 = vtanh.f32 %v195_v26  ;;  %v169_v49 = vadd.f32 %v610_v12, %v130_v33  ;;  %v173_v51 = vadd.f32 %v610_v12, %v140_v35 }
  0x98   :  { %510 = vtanh.f32 %v196_v27  ;;  %v189_v36 = vpack.c.bf16 %v180_v32, %v179_v31  ;;  %v187_v37 = vpack.c.bf16 %v176_v34, %v175_v28 }
  0x9a   :  { %v203_v38 = vunpack.c.l.bf16 %v189_v36  ;;  %v204_v39 = vunpack.c.h.bf16 %v189_v36  ;;  %v199_v41 = vunpack.c.l.bf16 %v187_v37  ;;  %v200_v43 = vunpack.c.h.bf16 %v187_v37 }
  0x9b   :  { %v505_v40 = vpop.eup %504 }
  0x9c   :  { %v507_v42 = vpop.eup %506  ;;  %512 = vtanh.f32 %v203_v38 }
  0x9d   :  { %v509_v44 = vpop.eup %508  ;;  %514 = vtanh.f32 %v204_v39  ;;  %v150_v45 = vpop.f32.mrf.mxu2  ;;  %v223_v46 = vpack.c.bf16 %v507_v42, %v505_v40 }
  0x9e   :  { %v160_v47 = vpop.f32.mrf.mxu3  ;;  %v511_v48 = vpop.eup %510  ;;  %516 = vtanh.f32 %v199_v41  ;;  %v177_v2 = vadd.f32 %v610_v12, %v150_v45 }
  0x9f   :  { %v132_v50 = vpop.f32.mrf.mxu0  ;;  %v142_v52 = vpop.f32.mrf.mxu1  ;;  %v225_v54 = vpack.c.bf16 %v511_v48, %v509_v44  ;;  %v231_v55 = vunpack.c.l.bf16 %v223_v46  ;;  %518 = vtanh.f32 %v200_v43  ;;  %v181_v4 = vadd.f32 %v610_v12, %v160_v47 }
  0xa0   :  { %v170_v53 = vadd.f32 %v615_v13, %v132_v50  ;;  %v174_v56 = vadd.f32 %v615_v13, %v142_v52  ;;  %v232_v7 = vunpack.c.h.bf16 %v223_v46 }
  0xa1   :  { %v235_v58 = vunpack.c.l.bf16 %v225_v54  ;;  %v248_v59 = vsel %vm91_vm0, %v231_v55, 0.0  ;;  %v236_v16 = vunpack.c.h.bf16 %v225_v54 }
  0xa2   :  { %v184_v57 = vpack.c.bf16 %v170_v53, %v169_v49  ;;  %v513_v60 = vpop.eup %512  ;;  %249 = vadd.xlane.f32.xlu0 %v248_v59  ;;  %v186_v1 = vpack.c.bf16 %v174_v56, %v173_v51  ;;  %v251_v12 = vsel %vm91_vm0, %v232_v7, 0.0  ;;  %v296_v7 = vstv %s675_s3 }
  0xa3   :  { %v515_v61 = vpop.eup %514  ;;  %v260_v0 = vsel %vm91_vm0, %v235_v58, 0.0  ;;  %v263_v25 = vsel %vm91_vm0, %v236_v16, 0.0 }
  0xa4   :  { %v193_v62 = vunpack.c.l.bf16 %v184_v57  ;;  %v194_v63 = vunpack.c.h.bf16 %v184_v57  ;;  %261 = vadd.xlane.f32.xlu2 %v260_v0  ;;  %v229_v3 = vpack.c.bf16 %v515_v61, %v513_v60  ;;  %v517_v5 = vpop.eup %516  ;;  %v197_v15 = vunpack.c.l.bf16 %v186_v1 }
  0xa5   :  { %v152_v6 = vpop.f32.mrf.mxu2  ;;  %v519_v9 = vpop.eup %518  ;;  %v198_v21 = vunpack.c.h.bf16 %v186_v1 }
  0xa6   :  { %520 = vtanh.f32 %v193_v62  ;;  %v162_v8 = vpop.f32.mrf.mxu3  ;;  %v244_v10 = vunpack.c.h.bf16 %v229_v3  ;;  %v178_v11 = vadd.f32 %v615_v13, %v152_v6  ;;  %v227_v20 = vpack.c.bf16 %v519_v9, %v517_v5 }
  0xa7   :  { %522 = vtanh.f32 %v194_v63  ;;  %v182_v14 = vadd.f32 %v615_v13, %v162_v8  ;;  %v243_v39 = vunpack.c.l.bf16 %v229_v3 }
  0xa8   :  { %v287_v17 = vsel %vm91_vm0, %v244_v10, 0.0  ;;  %v188_v18 = vpack.c.bf16 %v178_v11, %v177_v2  ;;  %524 = vtanh.f32 %v197_v15  ;;  %v240_v28 = vunpack.c.h.bf16 %v227_v20 }
  0xa9   :  { %v190_v19 = vpack.c.bf16 %v182_v14, %v181_v4  ;;  %288 = vadd.xlane.f32.xlu1 %v287_v17  ;;  %v239_v30 = vunpack.c.l.bf16 %v227_v20  ;;  %v284_v45 = vsel %vm91_vm0, %v243_v39, 0.0  ;;  %v329_v4 = vlaneseq }
  0xaa   :  { %v201_v22 = vunpack.c.l.bf16 %v188_v18  ;;  %v202_v23 = vunpack.c.h.bf16 %v188_v18  ;;  %252 = vadd.xlane.f32.xlu0 %v251_v12  ;;  %v275_v33 = vsel %vm91_vm0, %v240_v28, 0.0 }
  0xab   :  { %v205_v26 = vunpack.c.l.bf16 %v190_v19  ;;  %v206_v27 = vunpack.c.h.bf16 %v190_v19  ;;  %v272_v37 = vsel %vm91_vm0, %v239_v30, 0.0  ;;  %v330_v8 = vand.u32 127, %v329_v4 }
  0xac   :  { %v521_v24 = vpop.eup %520  ;;  %526 = vtanh.f32 %v201_v22  ;;  %264 = vadd.xlane.f32.xlu2 %v263_v25 }
  0xad   :  { %v523_v13 = vpop.eup %522  ;;  %528 = vtanh.f32 %v202_v23  ;;  %v332_v11 = vadd.s32 4294967288, %v330_v8 }
  0xae   :  { %v224_v29 = vpack.c.bf16 %v523_v13, %v521_v24  ;;  %530 = vtanh.f32 %v198_v21  ;;  %v525_v32 = vpop.eup %524 }
  0xaf   :  { %532 = vtanh.f32 %v205_v26 }
  0xb0   :  { %v233_v31 = vunpack.c.l.bf16 %v224_v29  ;;  %534 = vtanh.f32 %v206_v27  ;;  %v234_v42 = vunpack.c.h.bf16 %v224_v29 }
  0xb2   :  { %v254_v34 = vsel %vm91_vm0, %v233_v31, 0.0  ;;  %v527_v35 = vpop.eup %526  ;;  %276 = vadd.xlane.f32.xlu0 %v275_v33  ;;  %v257_v46 = vsel %vm91_vm0, %v234_v42, 0.0 }
  0xb3   :  { %255 = vadd.xlane.f32.xlu1 %v254_v34  ;;  %v529_v36 = vpop.eup %528 }
  0xb4   :  { %v531_v38 = vpop.eup %530  ;;  %273 = vadd.xlane.f32.xlu2 %v272_v37  ;;  %v228_v40 = vpack.c.bf16 %v529_v36, %v527_v35 }
  0xb5   :  { %v533_v41 = vpop.eup %532  ;;  %v226_v48 = vpack.c.bf16 %v531_v38, %v525_v32 }
  0xb6   :  { %v535_v43 = vpop.eup %534  ;;  %v242_v44 = vunpack.c.h.bf16 %v228_v40  ;;  %v241_v57 = vunpack.c.l.bf16 %v228_v40 }
  0xb7   :  { %v230_v49 = vpack.c.bf16 %v535_v43, %v533_v41  ;;  %v237_v50 = vunpack.c.l.bf16 %v226_v48  ;;  %v238_v51 = vunpack.c.h.bf16 %v226_v48 }
  0xb8   :  { %v281_v47 = vsel %vm91_vm0, %v242_v44, 0.0  ;;  %v278_v59 = vsel %vm91_vm0, %v241_v57, 0.0 }
  0xb9   :  { %v245_v52 = vunpack.c.l.bf16 %v230_v49  ;;  %v266_v53 = vsel %vm91_vm0, %v237_v50, 0.0  ;;  %v269_v54 = vsel %vm91_vm0, %v238_v51, 0.0  ;;  %v246_v56 = vunpack.c.h.bf16 %v230_v49 }
  0xba   :  { %285 = vadd.xlane.f32.xlu0 %v284_v45 }
  0xbb   :  { %258 = vadd.xlane.f32.xlu1 %v257_v46  ;;  %v290_v55 = vsel %vm91_vm0, %v245_v52, 0.0  ;;  %v293_v58 = vsel %vm91_vm0, %v246_v56, 0.0 }
  0xbc   :  { %282 = vadd.xlane.f32.xlu2 %v281_v47 }
  0xc2   :  { %267 = vadd.xlane.f32.xlu0 %v266_v53 }
  0xc3   :  { %270 = vadd.xlane.f32.xlu1 %v269_v54 }
  0xc4   :  { %291 = vadd.xlane.f32.xlu2 %v290_v55 }
  0xca   :  { %294 = vadd.xlane.f32.xlu0 %v293_v58 }
  0xcb   :  { %279 = vadd.xlane.f32.xlu1 %v278_v59 }
 0x115   :  { %v250_v60 = vpop.xlane.xlu0 %249 }
 0x116   :  { %v297_v16 = vmul.f32 %v296_v7, %v250_v60 }
 0x117   :  { %v262_v61 = vpop.xlane.xlu2 %261 }
 0x118   :  { %v301_v24 = vmul.f32 %v296_v7, %v262_v61  ;;  %v331_v25 = vperm.slane %v297_v16, %v330_v8 }
 0x11a   :  { %v339_v32 = vperm.slane %v301_v24, %v330_v8 }
 0x11c   :  { %v289_v62 = vpop.xlane.xlu1 %288 }
 0x11d   :  { %v253_v63 = vpop.xlane.xlu0 %252  ;;  %v310_v38 = vmul.f32 %v296_v7, %v289_v62 }
 0x11e   :  { %v298_v14 = vmul.f32 %v296_v7, %v253_v63 }
 0x11f   :  { %v265_v0 = vpop.xlane.xlu2 %264  ;;  %v352_v53 = vperm.slane %v310_v38, %v332_v11 }
 0x120   :  { %v302_v18 = vmul.f32 %v296_v7, %v265_v0  ;;  %v333_v20 = vperm.slane %v298_v14, %v332_v11 }
 0x122   :  { %v340_v28 = vperm.slane %v302_v18, %v332_v11  ;;  %v335_v31 = vsel %vm334_vm1, %v333_v20, %v331_v25 }
 0x124   :  { %v341_v39 = vsel %vm334_vm1, %v340_v28, %v339_v32 }
 0x125   :  { %v277_v1 = vpop.xlane.xlu0 %276 }
 0x126   :  { %v256_v2 = vpop.xlane.xlu1 %255  ;;  %v306_v30 = vmul.f32 %v296_v7, %v277_v1 }
 0x127   :  { %v274_v3 = vpop.xlane.xlu2 %273  ;;  %v299_v15 = vmul.f32 %v296_v7, %v256_v2 }
 0x128   :  { %v305_v29 = vmul.f32 %v296_v7, %v274_v3  ;;  %v346_v41 = vperm.slane %v306_v30, %v332_v11 }
 0x129   :  { %v336_v21 = vperm.slane %v299_v15, %v330_v8 }
 0x12a   :  { %v345_v40 = vperm.slane %v305_v29, %v330_v8 }
 0x12c   :  { %v347_v54 = vsel %vm334_vm1, %v346_v41, %v345_v40 }
 0x12d   :  { %v286_v5 = vpop.xlane.xlu0 %285 }
 0x12e   :  { %v259_v6 = vpop.xlane.xlu1 %258  ;;  %v309_v33 = vmul.f32 %v296_v7, %v286_v5 }
 0x12f   :  { %v300_v9 = vmul.f32 %v296_v7, %v259_v6  ;;  %v283_v10 = vpop.xlane.xlu2 %282 }
 0x130   :  { %v308_v36 = vmul.f32 %v296_v7, %v283_v10  ;;  %v351_v48 = vperm.slane %v309_v33, %v330_v8 }
 0x131   :  { %v337_v17 = vperm.slane %v300_v9, %v332_v11 }
 0x132   :  { %v349_v50 = vperm.slane %v308_v36, %v332_v11  ;;  %v353_v58 = vsel %vm334_vm1, %v352_v53, %v351_v48 }
 0x133   :  { %v338_v26 = vsel %vm334_vm1, %v337_v17, %v336_v21 }
 0x134   :  { %v358_v34 = vsel %vm357_vm2, %v338_v26, %v335_v31 }
 0x135   :  { %v268_v19 = vpop.xlane.xlu0 %267  ;;  %v360_v44 = vsel %vm359_vm3, %v341_v39, %v358_v34 }
 0x136   :  { %v271_v12 = vpop.xlane.xlu1 %270  ;;  %v303_v22 = vmul.f32 %v296_v7, %v268_v19 }
 0x137   :  { %v304_v23 = vmul.f32 %v296_v7, %v271_v12  ;;  %v292_v35 = vpop.xlane.xlu2 %291 }
 0x138   :  { %v342_v13 = vperm.slane %v303_v22, %v330_v8  ;;  %v311_v45 = vmul.f32 %v296_v7, %v292_v35 }
 0x139   :  { %v343_v27 = vperm.slane %v304_v23, %v332_v11 }
 0x13a   :  { %v354_v55 = vperm.slane %v311_v45, %v330_v8 }
 0x13b   :  { %v344_v37 = vsel %vm334_vm1, %v343_v27, %v342_v13 }
 0x13c   :  { %v362_v49 = vsel %vm361_vm4, %v344_v37, %v360_v44 }
 0x13d   :  { %v295_v42 = vpop.xlane.xlu0 %294  ;;  %v364_v57 = vsel %vm363_vm5, %v347_v54, %v362_v49 }
 0x13e   :  { %v280_v43 = vpop.xlane.xlu1 %279  ;;  %v312_v46 = vmul.f32 %v296_v7, %v295_v42 }
 0x13f   :  { %v307_v47 = vmul.f32 %v296_v7, %v280_v43 }
 0x140   :  { %v355_v51 = vperm.slane %v312_v46, %v332_v11 }
 0x141   :  { %v348_v52 = vperm.slane %v307_v47, %v330_v8 }
 0x142   :  { %v356_v60 = vsel %vm334_vm1, %v355_v51, %v354_v55 }
 0x143   :  { %v350_v56 = vsel %vm334_vm1, %v349_v50, %v348_v52 }
 0x144   :  { %v366_v59 = vsel %vm365_vm6, %v350_v56, %v364_v57 }
 0x145   :  { %v368_v61 = vsel %vm367_vm7, %v353_v58, %v366_v59 }
 0x146   :  { %v370_v62 = vsel %vm369_vm8, %v356_v60, %v368_v61 }
 0x147   :  { %372 = vxpose.xlu1.b32.start.end [1/1] (short) (narrow) %v370_v62, 16 }
 0x1eb   :  { %v388_v63 = vpop.trf.xlu1 }
 0x1ec   :  { %v405_v0 = vsel %vm404_vm9, %v388_v63, -inf }
 0x1ed   :  { %406 = vmax.xlane.f32.xlu2 %v405_v0 }
 0x1f3   :  { %v389_v1 = vpop.trf.xlu1 }
 0x1f4   :  { %v408_v2 = vsel %vm404_vm9, %v389_v1, -inf }
 0x1f5   :  { %409 = vmax.xlane.f32.xlu0 %v408_v2 }
 0x260   :  { %v407_v3 = vpop.xlane.xlu2 %406 }
 0x261   :  { %v411_v4 = vsub.f32 %v388_v63, %v407_v3 }
 0x263   :  { %v413_v5 = vmul.f32 1.442695, %v411_v4 }
 0x265   :  { %536 = vpow2.f32 %v413_v5 }
 0x268   :  { %v410_v6 = vpop.xlane.xlu0 %409 }
 0x269   :  { %v412_v7 = vsub.f32 %v389_v1, %v410_v6 }
 0x26b   :  { %v537_v8 = vpop.eup %536  ;;  %v415_v9 = vmul.f32 1.442695, %v412_v7 }
 0x26c   :  { %v417_v10 = vsel %vm404_vm9, %v537_v8, 0.0 }
 0x26d   :  { %538 = vpow2.f32 %v415_v9  ;;  %418 = vadd.xlane.f32.xlu2 %v417_v10 }
 0x273   :  { %v539_v11 = vpop.eup %538 }
 0x274   :  { %v420_v14 = vsel %vm404_vm9, %v539_v11, 0.0 }
 0x275   :  { %421 = vadd.xlane.f32.xlu0 %v420_v14 }
 0x2e0   :  { %v419_v15 = vpop.xlane.xlu2 %418 }
 0x2e1   :  { %540 = vrcp.f32 %v419_v15 }
 0x2e7   :  { %v541_v16 = vpop.eup %540 }
 0x2e8   :  { %v425_v17 = vmul.f32 %v541_v16, %v419_v15  ;;  %v422_v18 = vpop.xlane.xlu0 %421 }
 0x2e9   :  { %542 = vrcp.f32 %v422_v18 }
 0x2ea   :  { %v427_v19 = vsub.f32 2.0, %v425_v17 }
 0x2ec   :  { %v429_v12 = vmul.f32 %v541_v16, %v427_v19 }
 0x2ee   :  { %v431_v20 = vmul.f32 %v537_v8, %v429_v12 }
 0x2ef   :  { %v543_v21 = vpop.eup %542 }
 0x2f0   :  { %433 = vst.msk [vmem:[%s676_s4] sm:$0xff] %vm404_vm9, %v431_v20  ;;  %v426_v22 = vmul.f32 %v543_v21, %v422_v18 }
 0x2f2   :  { %v428_v23 = vsub.f32 2.0, %v426_v22 }
 0x2f4   :  { %v430_v24 = vmul.f32 %v543_v21, %v428_v23 }
 0x2f6   :  { %v432_v25 = vmul.f32 %v539_v11, %v430_v24 }
 0x2f8   :  { %434 = vst.msk [vmem:[%s676_s4 + $0x8] sm:$0xff] %vm404_vm9, %v432_v25 }

</bundles_post_ra>
